<compile_context>
chip_gen: v7x
topology: tpu7x:2x2x1
jax: 0.10.0
libtpu: 0.0.40
codegen_flags: <defaults>
</compile_context>

<pallas_src>
import functools

import jax
import jax.numpy as jnp
from jax.experimental import pallas as pl
from jax.experimental.pallas import tpu as pltpu

KERNEL_SIZE = 5            # Conv1d kernel_size=5
PAD = KERNEL_SIZE // 2     # padding=2 -> "same" output length
FRONT = 8                  # front halo rows in the scratch (>= PAD, multiple of 8 so the
                           # per-layer interior activation store is sublane-aligned)


def _word_cnn_fused_kernel(n_layers, c_out, t_valid, *refs):
    """Fused convnet + residual concat for one (bb, t_pad) batch-block.

    refs layout:
      refs[0]                 x_ref     (bb, t_pad, c_full)            f32  input (= residual)
      refs[1 + 2*l]           w_ref[l]  (5, C_in_l, c_out)             bf16 conv weights (tap-major)
      refs[2 + 2*l]           b_ref[l]  (1, c_out)                     f32  bias
      refs[1 + 2*n_layers]    o_ref     (bb, t_pad, c_out + c_full)    f32  output
      refs[2 + 2*n_layers]    pad_ref   (bb, FRONT + t_pad + 8, c_max) bf16 scratch (halo'd activation)
    """
    n_wb = 2 * n_layers
    x_ref = refs[0]
    wb_refs = refs[1:1 + n_wb]
    o_ref = refs[1 + n_wb]
    pad_ref = refs[2 + n_wb]

    bb, t_pad, _ = x_ref.shape
    pad_rows = pad_ref.shape[1]
    c_max = pad_ref.shape[2]

    # Zero only the halo / invalid-tail rows, once per grid step (not the whole scratch,
    # not every layer).  Interior rows [FRONT, FRONT + t_valid) are fully overwritten every
    # layer, and channel columns beyond a layer's C_in are never read, so nothing else
    # needs (re)zeroing.  Halo rows are never written, so they stay zero across layers.
    pad_ref[:, :FRONT, :] = jnp.zeros((bb, FRONT, c_max), pad_ref.dtype)
    pad_ref[:, FRONT + t_valid:, :] = jnp.zeros(
        (bb, pad_rows - FRONT - t_valid, c_max), pad_ref.dtype)

    x = x_ref[...]                       # residual branch (dropout is identity at eval)
    y = x                                # f32 activation of the current layer
    y_bf16 = x.astype(jnp.bfloat16)      # bf16 copy that feeds the scratch / MXU
    for layer in range(n_layers):
        w_ref = wb_refs[2 * layer]
        b_ref = wb_refs[2 * layer + 1]
        c = w_ref.shape[1]               # C_in of this layer

        # Write this layer's activation into the halo'd scratch (bf16, sublane-aligned start).
        pad_ref[:, FRONT:FRONT + t_valid, :c] = y_bf16[:, :t_valid, :]

        # Conv1d(k=5, pad=2) as 5 shifted MXU matmuls accumulated in f32: the shifted
        # windows are read directly from VMEM into the MXU — no im2col copy passes.
        acc = None
        for k in range(KERNEL_SIZE):
            lhs = pad_ref[:, FRONT - PAD + k:FRONT - PAD + k + t_pad, :c]
            part = jnp.dot(lhs.reshape(bb * t_pad, c), w_ref[k],
                           preferred_element_type=jnp.float32)
            acc = part if acc is None else acc + part

        acc = acc + b_ref[...]                               # f32 bias add (VPU)
        y = jnp.maximum(acc, 0.0).reshape(bb, t_pad, c_out)  # ReLU
        y_bf16 = y.astype(jnp.bfloat16)                      # single cast per layer
        # nn.Dropout(p=0.5) is identity in eval mode.

    # Fused output: torch.cat((conv_out, residual), dim=2), written as ONE lane-dense store.
    o_ref[...] = jnp.concatenate([y, x], axis=-1)


def _choose_batch_block(B, t_pad, target_rows=1024, min_grid_steps=4):
    """Batch elements per grid step.

    Grow the block toward `target_rows` rows (amortizes the ~0.35us per-grid-step pipeline
    overhead, grows DMA sizes toward the HBM roofline and the MXU M dim) while keeping at
    least `min_grid_steps` grid steps when the batch allows it (2 per v7x TensorCore, so
    both cores get work AND each still double-buffers its DMA).
    """
    divisors = [d for d in range(1, B + 1) if B % d == 0]
    cands = [d for d in divisors if d * t_pad <= max(target_rows, t_pad)]
    bb = max(cands)
    want_steps = min(min_grid_steps, B)
    if B // bb < want_steps:
        smaller = [d for d in divisors if B // d >= want_steps]
        if smaller:
            bb = max(smaller)
    return bb


def word_cnn_forward(token_ids, char_embeddings, params):
    """Forward pass matching word_cnn.forward (inference / eval mode).

    token_ids:       (B, T) int32
    char_embeddings: (B, T, char_dim) float32
    returns:         (B, T, out_channels + full_embedding_size) float32
    """
    # embedding lookup (frozen pretrained table) + concat with char features: plain-JAX glue
    emb = jnp.take(params["embedding"], token_ids, axis=0)              # (B, T, emb_dim)
    x = jnp.concatenate([emb, char_embeddings], axis=2).astype(jnp.float32)
    # nn.Dropout(p=0.5): identity at inference time.
    # TODO(synk): training-mode dropout (mask sampling) not implemented.

    B, T, c_full = x.shape
    conv = params["conv"]
    n_layers = len(conv)
    c_out = conv[0][0].shape[-1]
    c_max = max(c_full, c_out)
    out_c = c_out + c_full

    # Pad T to a multiple of 8 (sublane alignment) instead of shrinking the batch block;
    # the kernel keeps rows >= T zeroed between layers so boundary semantics are unchanged.
    t_pad = ((T + 7) // 8) * 8
    if t_pad != T:
        x = jnp.pad(x, ((0, 0), (0, t_pad - T), (0, 0)))

    bb = _choose_batch_block(B, t_pad)
    grid = (B // bb,)

    flat_wb = []
    in_specs = [pl.BlockSpec((bb, t_pad, c_full), lambda b: (b, 0, 0))]
    for (cw, cb) in conv:
        k, ci, co = cw.shape
        # tap-major (5, C_in, C_out), bf16 for the MXU; constant index_map -> fetched once.
        flat_wb.append(cw.astype(jnp.bfloat16))
        flat_wb.append(cb.reshape(1, co).astype(jnp.float32))
        in_specs.append(pl.BlockSpec((k, ci, co), lambda b: (0, 0, 0)))
        in_specs.append(pl.BlockSpec((1, co), lambda b: (0, 0)))

    flops = int(sum(2 * B * t_pad * cw.shape[0] * cw.shape[1] * cw.shape[2]
                    for cw, _ in conv))
    bytes_accessed = int(x.size * 4
                         + sum(a.size * a.dtype.itemsize for a in flat_wb)
                         + B * t_pad * out_c * 4)

    out = pl.pallas_call(
        functools.partial(_word_cnn_fused_kernel, n_layers, c_out, T),
        out_shape=jax.ShapeDtypeStruct((B, t_pad, out_c), jnp.float32),
        grid_spec=pltpu.PrefetchScalarGridSpec(
            num_scalar_prefetch=0,
            grid=grid,
            in_specs=in_specs,
            out_specs=pl.BlockSpec((bb, t_pad, out_c), lambda b: (b, 0, 0)),
            scratch_shapes=[
                pltpu.VMEM((bb, FRONT + t_pad + 8, c_max), jnp.bfloat16),
            ]),
        compiler_params=pltpu.CompilerParams(
            dimension_semantics=("parallel",)),
        cost_estimate=pl.CostEstimate(
            flops=flops, transcendentals=0, bytes_accessed=bytes_accessed),
    )(x, *flat_wb)

    if t_pad != T:
        out = out[:, :T, :]
    return out


def init_params(key, vocab_size, emb_dim, char_dim, out_channels, conv_layers):
    full = emb_dim + char_dim
    keys = jax.random.split(key, 1 + 2 * conv_layers)
    embedding = jax.random.normal(keys[0], (vocab_size, emb_dim), jnp.float32)
    conv = []
    c_in = full
    for i in range(conv_layers):
        fan_in = c_in * KERNEL_SIZE
        bound = 1.0 / jnp.sqrt(fan_in)
        w = jax.random.uniform(keys[1 + 2 * i], (KERNEL_SIZE, c_in, out_channels),
                               jnp.float32, -bound, bound)
        b = jax.random.uniform(keys[2 + 2 * i], (out_channels,),
                               jnp.float32, -bound, bound)
        conv.append((w, b))
        c_in = out_channels
    return {"embedding": embedding, "conv": conv}


def _reference_forward(token_ids, char_embeddings, params):
    """Pure-JAX f32 reference (lax conv) for a sanity check."""
    emb = jnp.take(params["embedding"], token_ids, axis=0)
    x = jnp.concatenate([emb, char_embeddings], axis=2)
    w_residual = x
    y = jnp.transpose(x, (0, 2, 1))      # (B, C, T) like PyTorch NCW
    for (cw, cb) in params["conv"]:
        w_oik = jnp.transpose(cw, (2, 1, 0))     # (5, C_in, C_out) -> (C_out, C_in, 5)
        y = jax.lax.conv_general_dilated(
            y, w_oik, window_strides=(1,), padding=((2, 2),),
            dimension_numbers=("NCH", "OIH", "NCH"))
        y = jnp.maximum(y + cb[None, :, None], 0.0)
    y = jnp.transpose(y, (0, 2, 1))
    return jnp.concatenate([y, w_residual], axis=2)


if __name__ == "__main__":
    # Small, module-consistent shapes.
    B, T = 2, 8
    vocab_size = 50
    emb_dim, char_dim = 24, 8            # full_embedding_size = 32
    out_channels = 32
    conv_layers = 2

    key = jax.random.PRNGKey(0)
    k_param, k_tok, k_char = jax.random.split(key, 3)
    params = init_params(k_param, vocab_size, emb_dim, char_dim,
                         out_channels, conv_layers)
    token_ids = jax.random.randint(k_tok, (B, T), 0, vocab_size, jnp.int32)
    char_embeddings = jax.random.normal(k_char, (B, T, char_dim), jnp.float32)

    out = word_cnn_forward(token_ids, char_embeddings, params)
    out = jax.block_until_ready(out)

    expected_shape = (B, T, out_channels + emb_dim + char_dim)
    assert out.shape == expected_shape, (out.shape, expected_shape)

    ref = jax.block_until_ready(
        _reference_forward(token_ids, char_embeddings, params))
    # bf16 MXU inputs (f32 accumulation) -> loosened tolerance vs. pure-f32 reference.
    max_err = float(jnp.max(jnp.abs(out - ref)))
    assert jnp.allclose(out, ref, atol=5e-2, rtol=5e-2), max_err

    print("KERNEL_OK")
</pallas_src>

<mosaic_0001>
module attributes {stable_mosaic.version = 11 : i64} {
  func.func @_word_cnn_fused_kernel(%arg0: i32, %arg1: memref<1x8x32xf32, #tpu.memory_space<vmem>>, %arg2: memref<5x32x32xbf16, #tpu.memory_space<vmem>>, %arg3: memref<1x32xf32, #tpu.memory_space<vmem>>, %arg4: memref<5x32x32xbf16, #tpu.memory_space<vmem>>, %arg5: memref<1x32xf32, #tpu.memory_space<vmem>>, %arg6: memref<1x8x64xf32, #tpu.memory_space<vmem>>, %arg7: memref<1x24x32xbf16, #tpu.memory_space<vmem>>) attributes {dimension_semantics = [#tpu.dimension_semantics<parallel>], iteration_bounds = array<i64: 2>, scalar_prefetch = 0 : i64, scratch_operands = 1 : i64, tpu.core_type = #tpu.core_type<tc>, window_params = [{transform_indices = @transform_0, window_bounds = array<i64: 1, 8, 32>}, {pipeline_mode = #tpu.pipeline_mode<synchronous>, transform_indices = @transform_1, window_bounds = array<i64: 5, 32, 32>}, {pipeline_mode = #tpu.pipeline_mode<synchronous>, transform_indices = @transform_2, window_bounds = array<i64: 1, 32>}, {pipeline_mode = #tpu.pipeline_mode<synchronous>, transform_indices = @transform_3, window_bounds = array<i64: 5, 32, 32>}, {pipeline_mode = #tpu.pipeline_mode<synchronous>, transform_indices = @transform_4, window_bounds = array<i64: 1, 32>}, {transform_indices = @transform_5, window_bounds = array<i64: 1, 8, 64>}]} {
    %cst = arith.constant 0.000000e+00 : bf16
    %0 = vector.broadcast %cst : bf16 to vector<1x8x32xbf16>
    %c0 = arith.constant 0 : index
    %c0_0 = arith.constant 0 : index
    %c0_1 = arith.constant 0 : index
    %1 = vector.load %arg7[%c0, %c0_0, %c0_1] : memref<1x24x32xbf16, #tpu.memory_space<vmem>>, vector<1x8x32xbf16>
    tpu.vector_store %arg7[%c0, %c0_0, %c0_1], %0 {strides = array<i32>} : memref<1x24x32xbf16, #tpu.memory_space<vmem>>, vector<1x8x32xbf16>,
    %cst_2 = arith.constant 0.000000e+00 : bf16
    %2 = vector.broadcast %cst_2 : bf16 to vector<1x8x32xbf16>
    %c0_3 = arith.constant 0 : index
    %c16 = arith.constant 16 : index
    %c0_4 = arith.constant 0 : index
    %3 = vector.load %arg7[%c0_3, %c16, %c0_4] : memref<1x24x32xbf16, #tpu.memory_space<vmem>>, vector<1x8x32xbf16>
    tpu.vector_store %arg7[%c0_3, %c16, %c0_4], %2 {strides = array<i32>} : memref<1x24x32xbf16, #tpu.memory_space<vmem>>, vector<1x8x32xbf16>,
    %c0_5 = arith.constant 0 : index
    %c0_6 = arith.constant 0 : index
    %c0_7 = arith.constant 0 : index
    %4 = vector.load %arg1[%c0_5, %c0_6, %c0_7] : memref<1x8x32xf32, #tpu.memory_space<vmem>>, vector<1x8x32xf32>
    %5 = arith.truncf %4 : vector<1x8x32xf32> to vector<1x8x32xbf16>
    %c0_8 = arith.constant 0 : index
    %c8 = arith.constant 8 : index
    %c0_9 = arith.constant 0 : index
    %6 = vector.load %arg7[%c0_8, %c8, %c0_9] : memref<1x24x32xbf16, #tpu.memory_space<vmem>>, vector<1x8x32xbf16>
    tpu.vector_store %arg7[%c0_8, %c8, %c0_9], %5 {strides = array<i32>} : memref<1x24x32xbf16, #tpu.memory_space<vmem>>, vector<1x8x32xbf16>,
    %c0_10 = arith.constant 0 : index
    %c6 = arith.constant 6 : index
    %c0_11 = arith.constant 0 : index
    %7 = vector.load %arg7[%c0_10, %c6, %c0_11] : memref<1x24x32xbf16, #tpu.memory_space<vmem>>, vector<1x8x32xbf16>
    %8 = vector.shape_cast %7 : vector<1x8x32xbf16> to vector<8x32xbf16>
    %c0_12 = arith.constant 0 : index
    %c0_13 = arith.constant 0 : index
    %c0_14 = arith.constant 0 : index
    %9 = vector.load %arg2[%c0_12, %c0_13, %c0_14] : memref<5x32x32xbf16, #tpu.memory_space<vmem>>, vector<1x32x32xbf16>
    %10 = vector.shape_cast %9 : vector<1x32x32xbf16> to vector<32x32xbf16>
    %cst_15 = arith.constant dense<0.000000e+00> : vector<8x32xf32>
    %11 = tpu.matmul %8, %10, %cst_15 {dimension_numbers = #tpu.dot_dimension_numbers<[1], [0], [0], [1], [0, 0, 1, 1], [], []>} : vector<8x32xbf16>, vector<32x32xbf16>, vector<8x32xf32> -> vector<8x32xf32>
    %c0_16 = arith.constant 0 : index
    %c7 = arith.constant 7 : index
    %c0_17 = arith.constant 0 : index
    %12 = vector.load %arg7[%c0_16, %c7, %c0_17] : memref<1x24x32xbf16, #tpu.memory_space<vmem>>, vector<1x8x32xbf16>
    %13 = vector.shape_cast %12 : vector<1x8x32xbf16> to vector<8x32xbf16>
    %c1 = arith.constant 1 : index
    %c0_18 = arith.constant 0 : index
    %c0_19 = arith.constant 0 : index
    %14 = vector.load %arg2[%c1, %c0_18, %c0_19] : memref<5x32x32xbf16, #tpu.memory_space<vmem>>, vector<1x32x32xbf16>
    %15 = vector.shape_cast %14 : vector<1x32x32xbf16> to vector<32x32xbf16>
    %cst_20 = arith.constant dense<0.000000e+00> : vector<8x32xf32>
    %16 = tpu.matmul %13, %15, %cst_20 {dimension_numbers = #tpu.dot_dimension_numbers<[1], [0], [0], [1], [0, 0, 1, 1], [], []>} : vector<8x32xbf16>, vector<32x32xbf16>, vector<8x32xf32> -> vector<8x32xf32>
    %17 = arith.addf %11, %16 : vector<8x32xf32>
    %c0_21 = arith.constant 0 : index
    %c8_22 = arith.constant 8 : index
    %c0_23 = arith.constant 0 : index
    %18 = vector.load %arg7[%c0_21, %c8_22, %c0_23] : memref<1x24x32xbf16, #tpu.memory_space<vmem>>, vector<1x8x32xbf16>
    %19 = vector.shape_cast %18 : vector<1x8x32xbf16> to vector<8x32xbf16>
    %c2 = arith.constant 2 : index
    %c0_24 = arith.constant 0 : index
    %c0_25 = arith.constant 0 : index
    %20 = vector.load %arg2[%c2, %c0_24, %c0_25] : memref<5x32x32xbf16, #tpu.memory_space<vmem>>, vector<1x32x32xbf16>
    %21 = vector.shape_cast %20 : vector<1x32x32xbf16> to vector<32x32xbf16>
    %cst_26 = arith.constant dense<0.000000e+00> : vector<8x32xf32>
    %22 = tpu.matmul %19, %21, %cst_26 {dimension_numbers = #tpu.dot_dimension_numbers<[1], [0], [0], [1], [0, 0, 1, 1], [], []>} : vector<8x32xbf16>, vector<32x32xbf16>, vector<8x32xf32> -> vector<8x32xf32>
    %23 = arith.addf %17, %22 : vector<8x32xf32>
    %c0_27 = arith.constant 0 : index
    %c9 = arith.constant 9 : index
    %c0_28 = arith.constant 0 : index
    %24 = vector.load %arg7[%c0_27, %c9, %c0_28] : memref<1x24x32xbf16, #tpu.memory_space<vmem>>, vector<1x8x32xbf16>
    %25 = vector.shape_cast %24 : vector<1x8x32xbf16> to vector<8x32xbf16>
    %c3 = arith.constant 3 : index
    %c0_29 = arith.constant 0 : index
    %c0_30 = arith.constant 0 : index
    %26 = vector.load %arg2[%c3, %c0_29, %c0_30] : memref<5x32x32xbf16, #tpu.memory_space<vmem>>, vector<1x32x32xbf16>
    %27 = vector.shape_cast %26 : vector<1x32x32xbf16> to vector<32x32xbf16>
    %cst_31 = arith.constant dense<0.000000e+00> : vector<8x32xf32>
    %28 = tpu.matmul %25, %27, %cst_31 {dimension_numbers = #tpu.dot_dimension_numbers<[1], [0], [0], [1], [0, 0, 1, 1], [], []>} : vector<8x32xbf16>, vector<32x32xbf16>, vector<8x32xf32> -> vector<8x32xf32>
    %29 = arith.addf %23, %28 : vector<8x32xf32>
    %c0_32 = arith.constant 0 : index
    %c10 = arith.constant 10 : index
    %c0_33 = arith.constant 0 : index
    %30 = vector.load %arg7[%c0_32, %c10, %c0_33] : memref<1x24x32xbf16, #tpu.memory_space<vmem>>, vector<1x8x32xbf16>
    %31 = vector.shape_cast %30 : vector<1x8x32xbf16> to vector<8x32xbf16>
    %c4 = arith.constant 4 : index
    %c0_34 = arith.constant 0 : index
    %c0_35 = arith.constant 0 : index
    %32 = vector.load %arg2[%c4, %c0_34, %c0_35] : memref<5x32x32xbf16, #tpu.memory_space<vmem>>, vector<1x32x32xbf16>
    %33 = vector.shape_cast %32 : vector<1x32x32xbf16> to vector<32x32xbf16>
    %cst_36 = arith.constant dense<0.000000e+00> : vector<8x32xf32>
    %34 = tpu.matmul %31, %33, %cst_36 {dimension_numbers = #tpu.dot_dimension_numbers<[1], [0], [0], [1], [0, 0, 1, 1], [], []>} : vector<8x32xbf16>, vector<32x32xbf16>, vector<8x32xf32> -> vector<8x32xf32>
    %35 = arith.addf %29, %34 : vector<8x32xf32>
    %c0_37 = arith.constant 0 : index
    %c0_38 = arith.constant 0 : index
    %36 = vector.load %arg3[%c0_37, %c0_38] : memref<1x32xf32, #tpu.memory_space<vmem>>, vector<1x32xf32>
    %37 = vector.broadcast %36 : vector<1x32xf32> to vector<8x32xf32>
    %38 = arith.addf %35, %37 : vector<8x32xf32>
    %cst_39 = arith.constant 0.000000e+00 : f32
    %39 = vector.broadcast %cst_39 : f32 to vector<8x32xf32>
    %40 = arith.maximumf %38, %39 : vector<8x32xf32>
    %41 = vector.shape_cast %40 : vector<8x32xf32> to vector<1x8x32xf32>
    %42 = arith.truncf %41 : vector<1x8x32xf32> to vector<1x8x32xbf16>
    %c0_40 = arith.constant 0 : index
    %c8_41 = arith.constant 8 : index
    %c0_42 = arith.constant 0 : index
    %43 = vector.load %arg7[%c0_40, %c8_41, %c0_42] : memref<1x24x32xbf16, #tpu.memory_space<vmem>>, vector<1x8x32xbf16>
    tpu.vector_store %arg7[%c0_40, %c8_41, %c0_42], %42 {strides = array<i32>} : memref<1x24x32xbf16, #tpu.memory_space<vmem>>, vector<1x8x32xbf16>,
    %c0_43 = arith.constant 0 : index
    %c6_44 = arith.constant 6 : index
    %c0_45 = arith.constant 0 : index
    %44 = vector.load %arg7[%c0_43, %c6_44, %c0_45] : memref<1x24x32xbf16, #tpu.memory_space<vmem>>, vector<1x8x32xbf16>
    %45 = vector.shape_cast %44 : vector<1x8x32xbf16> to vector<8x32xbf16>
    %c0_46 = arith.constant 0 : index
    %c0_47 = arith.constant 0 : index
    %c0_48 = arith.constant 0 : index
    %46 = vector.load %arg4[%c0_46, %c0_47, %c0_48] : memref<5x32x32xbf16, #tpu.memory_space<vmem>>, vector<1x32x32xbf16>
    %47 = vector.shape_cast %46 : vector<1x32x32xbf16> to vector<32x32xbf16>
    %cst_49 = arith.constant dense<0.000000e+00> : vector<8x32xf32>
    %48 = tpu.matmul %45, %47, %cst_49 {dimension_numbers = #tpu.dot_dimension_numbers<[1], [0], [0], [1], [0, 0, 1, 1], [], []>} : vector<8x32xbf16>, vector<32x32xbf16>, vector<8x32xf32> -> vector<8x32xf32>
    %c0_50 = arith.constant 0 : index
    %c7_51 = arith.constant 7 : index
    %c0_52 = arith.constant 0 : index
    %49 = vector.load %arg7[%c0_50, %c7_51, %c0_52] : memref<1x24x32xbf16, #tpu.memory_space<vmem>>, vector<1x8x32xbf16>
    %50 = vector.shape_cast %49 : vector<1x8x32xbf16> to vector<8x32xbf16>
    %c1_53 = arith.constant 1 : index
    %c0_54 = arith.constant 0 : index
    %c0_55 = arith.constant 0 : index
    %51 = vector.load %arg4[%c1_53, %c0_54, %c0_55] : memref<5x32x32xbf16, #tpu.memory_space<vmem>>, vector<1x32x32xbf16>
    %52 = vector.shape_cast %51 : vector<1x32x32xbf16> to vector<32x32xbf16>
    %cst_56 = arith.constant dense<0.000000e+00> : vector<8x32xf32>
    %53 = tpu.matmul %50, %52, %cst_56 {dimension_numbers = #tpu.dot_dimension_numbers<[1], [0], [0], [1], [0, 0, 1, 1], [], []>} : vector<8x32xbf16>, vector<32x32xbf16>, vector<8x32xf32> -> vector<8x32xf32>
    %54 = arith.addf %48, %53 : vector<8x32xf32>
    %c0_57 = arith.constant 0 : index
    %c8_58 = arith.constant 8 : index
    %c0_59 = arith.constant 0 : index
    %55 = vector.load %arg7[%c0_57, %c8_58, %c0_59] : memref<1x24x32xbf16, #tpu.memory_space<vmem>>, vector<1x8x32xbf16>
    %56 = vector.shape_cast %55 : vector<1x8x32xbf16> to vector<8x32xbf16>
    %c2_60 = arith.constant 2 : index
    %c0_61 = arith.constant 0 : index
    %c0_62 = arith.constant 0 : index
    %57 = vector.load %arg4[%c2_60, %c0_61, %c0_62] : memref<5x32x32xbf16, #tpu.memory_space<vmem>>, vector<1x32x32xbf16>
    %58 = vector.shape_cast %57 : vector<1x32x32xbf16> to vector<32x32xbf16>
    %cst_63 = arith.constant dense<0.000000e+00> : vector<8x32xf32>
    %59 = tpu.matmul %56, %58, %cst_63 {dimension_numbers = #tpu.dot_dimension_numbers<[1], [0], [0], [1], [0, 0, 1, 1], [], []>} : vector<8x32xbf16>, vector<32x32xbf16>, vector<8x32xf32> -> vector<8x32xf32>
    %60 = arith.addf %54, %59 : vector<8x32xf32>
    %c0_64 = arith.constant 0 : index
    %c9_65 = arith.constant 9 : index
    %c0_66 = arith.constant 0 : index
    %61 = vector.load %arg7[%c0_64, %c9_65, %c0_66] : memref<1x24x32xbf16, #tpu.memory_space<vmem>>, vector<1x8x32xbf16>
    %62 = vector.shape_cast %61 : vector<1x8x32xbf16> to vector<8x32xbf16>
    %c3_67 = arith.constant 3 : index
    %c0_68 = arith.constant 0 : index
    %c0_69 = arith.constant 0 : index
    %63 = vector.load %arg4[%c3_67, %c0_68, %c0_69] : memref<5x32x32xbf16, #tpu.memory_space<vmem>>, vector<1x32x32xbf16>
    %64 = vector.shape_cast %63 : vector<1x32x32xbf16> to vector<32x32xbf16>
    %cst_70 = arith.constant dense<0.000000e+00> : vector<8x32xf32>
    %65 = tpu.matmul %62, %64, %cst_70 {dimension_numbers = #tpu.dot_dimension_numbers<[1], [0], [0], [1], [0, 0, 1, 1], [], []>} : vector<8x32xbf16>, vector<32x32xbf16>, vector<8x32xf32> -> vector<8x32xf32>
    %66 = arith.addf %60, %65 : vector<8x32xf32>
    %c0_71 = arith.constant 0 : index
    %c10_72 = arith.constant 10 : index
    %c0_73 = arith.constant 0 : index
    %67 = vector.load %arg7[%c0_71, %c10_72, %c0_73] : memref<1x24x32xbf16, #tpu.memory_space<vmem>>, vector<1x8x32xbf16>
    %68 = vector.shape_cast %67 : vector<1x8x32xbf16> to vector<8x32xbf16>
    %c4_74 = arith.constant 4 : index
    %c0_75 = arith.constant 0 : index
    %c0_76 = arith.constant 0 : index
    %69 = vector.load %arg4[%c4_74, %c0_75, %c0_76] : memref<5x32x32xbf16, #tpu.memory_space<vmem>>, vector<1x32x32xbf16>
    %70 = vector.shape_cast %69 : vector<1x32x32xbf16> to vector<32x32xbf16>
    %cst_77 = arith.constant dense<0.000000e+00> : vector<8x32xf32>
    %71 = tpu.matmul %68, %70, %cst_77 {dimension_numbers = #tpu.dot_dimension_numbers<[1], [0], [0], [1], [0, 0, 1, 1], [], []>} : vector<8x32xbf16>, vector<32x32xbf16>, vector<8x32xf32> -> vector<8x32xf32>
    %72 = arith.addf %66, %71 : vector<8x32xf32>
    %c0_78 = arith.constant 0 : index
    %c0_79 = arith.constant 0 : index
    %73 = vector.load %arg5[%c0_78, %c0_79] : memref<1x32xf32, #tpu.memory_space<vmem>>, vector<1x32xf32>
    %74 = vector.broadcast %73 : vector<1x32xf32> to vector<8x32xf32>
    %75 = arith.addf %72, %74 : vector<8x32xf32>
    %cst_80 = arith.constant 0.000000e+00 : f32
    %76 = vector.broadcast %cst_80 : f32 to vector<8x32xf32>
    %77 = arith.maximumf %75, %76 : vector<8x32xf32>
    %78 = vector.shape_cast %77 : vector<8x32xf32> to vector<1x8x32xf32>
    %79 = tpu.concatenate %78, %4 in 2 : vector<1x8x32xf32>, vector<1x8x32xf32> -> vector<1x8x64xf32>
    %c0_81 = arith.constant 0 : index
    %c0_82 = arith.constant 0 : index
    %c0_83 = arith.constant 0 : index
    %80 = vector.load %arg6[%c0_81, %c0_82, %c0_83] : memref<1x8x64xf32, #tpu.memory_space<vmem>>, vector<1x8x64xf32>
    tpu.vector_store %arg6[%c0_81, %c0_82, %c0_83], %79 {strides = array<i32>} : memref<1x8x64xf32, #tpu.memory_space<vmem>>, vector<1x8x64xf32>,
    return
  }
  func.func @transform_0(%arg0: i32) -> (i32, i32, i32) {
    %c0_i32 = arith.constant 0 : i32
    %c0_i32_0 = arith.constant 0 : i32
    %c0_i32_1 = arith.constant 0 : i32
    return %arg0, %c0_i32, %c0_i32_0 : i32, i32, i32
  }
  func.func @transform_1(%arg0: i32) -> (i32, i32, i32) {
    %c0_i32 = arith.constant 0 : i32
    %c0_i32_0 = arith.constant 0 : i32
    %c0_i32_1 = arith.constant 0 : i32
    %c0_i32_2 = arith.constant 0 : i32
    return %c0_i32, %c0_i32_0, %c0_i32_1 : i32, i32, i32
  }
  func.func @transform_2(%arg0: i32) -> (i32, i32) {
    %c0_i32 = arith.constant 0 : i32
    %c0_i32_0 = arith.constant 0 : i32
    %c0_i32_1 = arith.constant 0 : i32
    return %c0_i32, %c0_i32_0 : i32, i32
  }
  func.func @transform_3(%arg0: i32) -> (i32, i32, i32) {
    %c0_i32 = arith.constant 0 : i32
    %c0_i32_0 = arith.constant 0 : i32
    %c0_i32_1 = arith.constant 0 : i32
    %c0_i32_2 = arith.constant 0 : i32
    return %c0_i32, %c0_i32_0, %c0_i32_1 : i32, i32, i32
  }
  func.func @transform_4(%arg0: i32) -> (i32, i32) {
    %c0_i32 = arith.constant 0 : i32
    %c0_i32_0 = arith.constant 0 : i32
    %c0_i32_1 = arith.constant 0 : i32
    return %c0_i32, %c0_i32_0 : i32, i32
  }
  func.func @transform_5(%arg0: i32) -> (i32, i32, i32) {
    %c0_i32 = arith.constant 0 : i32
    %c0_i32_0 = arith.constant 0 : i32
    %c0_i32_1 = arith.constant 0 : i32
    return %arg0, %c0_i32, %c0_i32_0 : i32, i32, i32
  }
}

</mosaic_0001>

<bundles_post_ra>
// kernel: tpu_custom_call.1
= control target key start
LH: loop header
LB: loop body
LE: loop exit
PB: predicated region body
PF: predicated region fallthrough
CT: control target
= control target key end

     0   :  { %10 = vsyncpa [#allocation4], 0  ;;  %s1852_s0 = inlined_call_operand.hbm [shape: f32[2,8,32], index: 0, kind: input, shape index: {}]   ;;  %s1853_s1 = inlined_call_operand.hbm [shape: bf16[5,32,32], index: 1, kind: input, shape index: {}]   ;;  %s1854_s2 = inlined_call_operand.vmem [shape: f32[1,32], index: 2, kind: input, shape index: {}]   ;;  %s1855_s3 = inlined_call_operand.hbm [shape: bf16[5,32,32], index: 3, kind: input, shape index: {}]   ;;  %s1856_s4 = inlined_call_operand.vmem [shape: f32[1,32], index: 4, kind: input, shape index: {}]   ;;  %s1857_s5 = inlined_call_operand.hbm [shape: f32[2,8,64], index: 5, kind: output, shape index: {}]  }
   0x1   :  { %12 = vsyncpa [#allocation4 + $0x1], 0 }
   0x2   :  { %13 = vsyncpa [#allocation7], 0 }
   0x3   :  { %14 = vsyncpa [#allocation5], 0 }
   0x4   :  { %16 = vsyncpa [#allocation5 + $0x1], 0  ;;  %s1553_s18 = smov 0   ;;  %s1555_s19 = smov 0  }
   0x5   :  { %s1557_s20 = smov 0   ;;  %s1559_s21 = smov 0  }
   0x6 LB: > { %s1574_s22 = sadd.s32 4294967295, %s1511_s21   ;;  %s1089_s23 = sadd.s32 4294967294, %s1511_s21   ;;  %s1511_s21 = sphi %s1559_s21, %s1877_s21   ;;  %s1507_s20 = sphi %s1557_s20, %s1876_s20   ;;  %s1503_s19 = sphi %s1555_s19, %s1875_s19   ;;  %s1499_s18 = sphi %s1553_s18, %s1874_s18  }
   0x7   : > { %p42_p0 = scmp.ne.s32.totalorder %s1503_s19, %s1499_s18  ;;  %p1858_p1 = scmp.eq.s32.totalorder %s1574_s22, 0 }
   0x8   : > { %p156_p3 = scmp.eq.s32.totalorder %s1089_s23, 1  ;;  %p1090_p5 = scmp.ge.s32.totalorder %s1511_s21, 1 }
   0x9   : > { %p1583_p4 = por %p1858_p1, %p42_p0  ;;  %p163_p7 = scmp.lt.s32.totalorder %s1511_s21, 3 }
   0xa   : > { %p1588_p6 = por %p156_p3, %p42_p0  ;;  %s1513_s27 = smov [#allocation6]  }
   0xb   : > { %s1861_s24 = scalar_select %p1583_p4, 1, 0 }
   0xc   : > { %s1862_s25 = scalar_select %p1588_p6, 1, 0 }
   0xd   : > { %p1593_p8 = pnand %p1090_p5, %p163_p7  ;;  %s175_s28 = sshll.u32 %s1513_s27, 4  ;;  %s1597_s28 = int_to_ptr.vmem [resolvable:$true] %s175_s28 }
   0xe   : > { %s1514_s30 = smov [#allocation8]   ;;  %s1355_s9 = scalar_lea.hbm %s1853_s1, 1280 }
   0xf   : > { %p1267_p9 = pneg %p1593_p8  ;;  %s191_s6 = sshll.u32 %s1514_s30, 4  ;;  %s1608_s6 = int_to_ptr.vmem [resolvable:$true] %s191_s6 }
  0x10   : > { %p1356_p12 = scmp.ne.s32.totalorder %s1853_s1, %s1355_s9  ;;  %p1362_p5 = scmp.lt.u32.totalorder %s1355_s9, %s1853_s1 }
  0x11   : > { %p1604_p11 = pnand %p1267_p9, %p1858_p1 }
  0x13   : > { %p1357_p13 = pneg %p1604_p11 }
  0x15   : > { %p1358_p0 = pnand %p1357_p13, %p1356_p12 }
  0x17   : > { %p1359_p3 = pneg %p1358_p0 }
  0x19   : > { %p1364_p7 = pnand %p1362_p5, %p1359_p3 }
  0x1b   : > { %1367 = shalt.err (!%p1364_p7)
}
  0x1c   : > { %s1368_s14 = scalar_lea.vmem %s1597_s28, 1280  ;;  %p1376_p2 = scmp.lt.s32.totalorder %s1597_s28, %s1597_s28 }
  0x1d   : > { %p1369_p9 = scmp.ne.s32.totalorder %s1597_s28, %s1368_s14  ;;  %p1377_p12 = scmp.lt.s32.totalorder %s1368_s14, %s1368_s14 }
  0x1f   : > { %p1371_p10 = pnand %p1369_p9, %p1357_p13  ;;  %p1378_p0 = por %p1377_p12, %p1376_p2 }
  0x21   : > { %p1372_p1 = pneg %p1371_p10 }
  0x23   : > { %p1379_p6 = pnand %p1378_p0, %p1372_p1 }
  0x25   : > { %1382 = shalt.err (!%p1379_p6)
}
  0x26   : > { %s1515_s15 = smov 64   ;;  %s1516_s16 = smov 4  }
  0x27   : > { %1270 = dma.hbm_to_vmem [thread:$0]  (!%p1604_p11), %s1853_s1, 1280, %s1597_s28, [#allocation7], %s1515_s15, %s1515_s15, %s1516_s16  }
  0x28   : > { %s1383_s7 = scalar_lea.hbm %s1855_s3, 1280 }
  0x29   : > { %p1384_p2 = scmp.ne.s32.totalorder %s1855_s3, %s1383_s7  ;;  %p1390_p10 = scmp.lt.u32.totalorder %s1383_s7, %s1855_s3 }
  0x2b   : > { %p1386_p1 = pnand %p1384_p2, %p1357_p13 }
  0x2d   : > { %p1387_p6 = pneg %p1386_p1 }
  0x2f   : > { %p1392_p3 = pnand %p1390_p10, %p1387_p6 }
  0x31   : > { %1395 = shalt.err (!%p1392_p3)
}
  0x32   : > { %s1396_s28 = scalar_lea.vmem %s1608_s6, 1280  ;;  %p1404_p12 = scmp.lt.s32.totalorder %s1608_s6, %s1608_s6 }
  0x33   : > { %p1397_p5 = scmp.ne.s32.totalorder %s1608_s6, %s1396_s28  ;;  %p1405_p0 = scmp.lt.s32.totalorder %s1396_s28, %s1396_s28 }
  0x35   : > { %p1399_p7 = pnand %p1397_p5, %p1357_p13  ;;  %p1406_p2 = por %p1405_p0, %p1404_p12 }
  0x37   : > { %p1400_p9 = pneg %p1399_p7 }
  0x39   : > { %p1407_p1 = pnand %p1406_p2, %p1400_p9 }
  0x3b   : > { %1410 = shalt.err (!%p1407_p1)
}
  0x3c   : > { %1273 = dma.hbm_to_vmem [thread:$0]  (!%p1604_p11), %s1855_s3, 1280, %s1608_s6, [#allocation7], %s1515_s15, %s1515_s15, %s1516_s16  }
  0x3d   : > { %s1663_s14 = sadd.s32 1, %s1511_s21   ;;  %s29_s29 = sadd.s32 1, %s1507_s20 }
  0x3e   : > { %s26_s17 = ssub.s32 %s1511_s21, %s1663_s14  ;;  %p36_p13 = scmp.ne.s32.totalorder %s1507_s20, %s1503_s19 }
  0x3f   : > { %p27_p6 = scmp.eq.s32.totalorder %s26_s17, 0  ;;  %p37_p10 = scmp.eq.s32.totalorder %s1511_s21, 0 }
  0x40   : > { %p1865_p3 = scmp.eq.s32.totalorder %s1574_s22, 1  ;;  %p1284_p7 = scmp.lt.s32.totalorder %s1511_s21, 2 }
  0x41   : > { %s1679_s27 = scalar_select %p27_p6, %s1507_s20, %s29_s29  }
  0x42   : > { %p1673_p5 = por %p1865_p3, %p36_p13  ;;  %p38_p9 = por %p37_p10, %p36_p13 }
  0x43   : > { %s208_s30 = sand.u32 1, %s1507_s20   ;;  %s1095_s6 = sshll.u32 %s1511_s21, 7 }
  0x44   : > { %s1866_s23 = scalar_select %p1673_p5, 1, 0 }
  0x45   : > { %s1094_s7 = sshll.u32 %s208_s30, 3  ;;  %s1686_s8 = scalar_lea.hbm %s1852_s0, %s1095_s6 }
  0x46   : > { %s212_s9 = scalar_lea.vmem [#allocation3], %s1094_s7  ;;  %p1690_p11 = pnand %p1284_p7, %p38_p9 }
  0x47   : > { %s219_s10 = sshll.u32 %s212_s9, 4  ;;  %s209_s28 = scalar_lea.sflag [#allocation4], %s208_s30  ;;  %s1688_s10 = int_to_ptr.vmem [resolvable:$true] %s219_s10 }
  0x48   : > { %s1411_s12 = scalar_lea.hbm %s1686_s8, 128  ;;  %p1413_p0 = pneg %p1690_p11 }
  0x49   : > { %p1412_p12 = scmp.ne.s32.totalorder %s1686_s8, %s1411_s12  ;;  %s1416_s17 = scalar_lea.hbm %s1852_s0, 256 }
  0x4a   : > { %p1417_p13 = scmp.lt.u32.totalorder %s1686_s8, %s1852_s0  ;;  %p1418_p6 = scmp.lt.u32.totalorder %s1416_s17, %s1411_s12 }
  0x4b   : > { %p1414_p2 = pnand %p1413_p0, %p1412_p12  ;;  %p1420_p3 = scmp.lt.u32.totalorder %s1411_s12, %s1686_s8 }
  0x4c   : > { %p1419_p10 = por %p1418_p6, %p1417_p13 }
  0x4d   : > { %p1415_p1 = pneg %p1414_p2 }
  0x4e   : > { %p1421_p7 = por %p1420_p3, %p1419_p10 }
  0x50   : > { %p1422_p9 = pnand %p1421_p7, %p1415_p1 }
  0x52   : > { %1425 = shalt.err (!%p1422_p9)
}
  0x53   : > { %s1426_s30 = scalar_lea.vmem %s1688_s10, 128  ;;  %s1517_s15 = smov [#allocation3]  }
  0x54   : > { %p1427_p12 = scmp.ne.s32.totalorder %s1688_s10, %s1426_s30  ;;  %s1431_s16 = sshll.u32 %s1517_s15, 4  ;;  %s1432_s16 = int_to_ptr.vmem [resolvable:$false] %s1431_s16 }
  0x55   : > { %s1433_s9 = scalar_lea.vmem %s1432_s16, 256  ;;  %p1434_p4 = scmp.lt.s32.totalorder %s1688_s10, %s1432_s16 }
  0x56   : > { %p1429_p2 = pnand %p1427_p12, %p1413_p0  ;;  %p1435_p13 = scmp.lt.s32.totalorder %s1433_s9, %s1426_s30 }
  0x58   : > { %p1430_p5 = pneg %p1429_p2  ;;  %p1436_p6 = por %p1435_p13, %p1434_p4 }
  0x5a   : > { %p1437_p10 = pnand %p1436_p6, %p1430_p5 }
  0x5c   : > { %1440 = shalt.err (!%p1437_p10)
}
  0x5d   : > { %1277 = dma.hbm_to_vmem [thread:$0]  (!%p1690_p11), %s1686_s8, 128, %s1688_s10, %s209_s28  }
  0x5e   : > { %228 = sbr.rel (%p1593_p8) target bundleno = 628 (0x274), region = 40  ;;  %s1722_s12 = sand.u32 (!%p1593_p8), 1, %s1503_s19  }
  0x5f   : > { %s1097_s13 = sshll.u32 (!%p1593_p8), %s1722_s12, 3  ;;  %s231_s29 = scalar_lea.sflag (!%p1593_p8), [#allocation4], %s1722_s12 }
  0x60   : > { %s234_s17 = scalar_lea.vmem (!%p1593_p8), [#allocation3], %s1097_s13  ;;  %p1868_p4 = scmp.ne.s32.totalorder (!%p1593_p8), %s1861_s24, 0 }
  0x65   : > { %1486 = dma.done.wait (%p1868_p4), %s231_s29, 128  }
  0x66   : > { %1488 = vsyncadd (%p1868_p4), %s231_s29, 4294967168  ;;  %p1869_p5 = scmp.eq.s32.totalorder %s1574_s22, 0 }
  0x68   : > { %1490 = dma.done.wait (%p1869_p5), [#allocation7], 2560   ;;  %p1870_p8 = pmov %p1869_p5 }
  0x69   : > { %vm270_vm0 = vcmask 257024   ;;  %v1518_v0 = vmov 0.0   ;;  %v1519_v1 = vmov 0   ;;  %vm1520_vm1 = vmmov 0   ;;  %v1328_v2 = vld [vmem:[#allocation6 + $0x10] sm:$0xff]   ;;  %v1329_v3 = vld [vmem:[#allocation6] sm:$0xff]  }
  0x6a   : > { %1492 = vsyncadd (%p1870_p8), [#allocation7], 4294964736  ;;  %1175 = vmatprep.subr.bf16.mxu0 %v1518_v0  ;;  %1183 = vmatprep.subr.bf16.mxu1 %v1518_v0  ;;  %271 = vst.msk [vmem:[#allocation2] sm:$0xf] %vm270_vm0, %v1519_v1  ;;  %v1330_v4 = vld [vmem:[#allocation6 + $0x18] sm:$0xff]   ;;  %v1331_v5 = vld [vmem:[#allocation6 + $0x8] sm:$0xff]  }
  0x6b   : > { %272 = vst.msk [vmem:[#allocation2 + $0x8] sm:$0xf] %vm270_vm0, %v1519_v1  ;;  %1179 = vmatprep.mubr.msk.bf16.mxu0 %vm1520_vm1, %v1518_v0  ;;  %1187 = vmatprep.mubr.msk.bf16.mxu1 %vm1520_vm1, %v1518_v0  ;;  %v1746_v6 = vld [vmem:[%s234_s17] sm:$0xff]  ;;  %vm313_vm2 = vcmask 261120   ;;  %v1333_v23 = vld [vmem:[#allocation6 + $0x20] sm:$0xff]   ;;  %v1335_v28 = vld [vmem:[#allocation6 + $0x28] sm:$0xff]  }
  0x6c   : > { %1176 = vmatpush3.bf16.msra.mxu0 %v1328_v2  ;;  %1184 = vmatpush3.bf16.msra.mxu1 %v1329_v3  ;;  %v274_v7 = vpack.c.bf16 %v1746_v6, %v1746_v6  ;;  %v1334_v15 = vld [vmem:[#allocation6 + $0x30] sm:$0xff]   ;;  %v1336_v27 = vld [vmem:[#allocation6 + $0x38] sm:$0xff]   ;;  %v1337_v30 = vld [vmem:[#allocation6 + $0x40] sm:$0xff]   ;;  %s1521_s24 = smov 32   ;;  %s1142_s28 = sshll.u32 %s1574_s22, 7  ;;  %vm984_vm3 = vcmask 523264  }
  0x6d   : > { %1177 = vmatprep.subr.bf16.mxu0 %v1518_v0  ;;  %1185 = vmatprep.subr.bf16.mxu1 %v1518_v0  ;;  %v1339_v33 = vld [vmem:[#allocation6 + $0x48] sm:$0xff]   ;;  %v1341_v35 = vld [vmem:[#allocation8] sm:$0xff]   ;;  %v1342_v36 = vld [vmem:[#allocation8 + $0x10] sm:$0xff]   ;;  %s268_s7 = scalar_lea.vmem [#allocation9], %s1097_s13  ;;  %s1807_s16 = scalar_lea.hbm %s1857_s5, %s1142_s28 }
  0x6e   : > { %275 = vst.msk [vmem:[#allocation2 + $0x4] sm:$0xf] %vm270_vm0, %v274_v7  ;;  %v1343_v37 = vld [vmem:[#allocation8 + $0x8] sm:$0xff]   ;;  %v1344_v38 = vld [vmem:[#allocation8 + $0x18] sm:$0xff]   ;;  %980 = vrot.lane.b32.xlu0 %v1746_v6, %s1521_s24  ;;  %v1120_v59 = vld [vmem:[%s1854_s2] ss:$0 sm:$0xff] }
  0x6f   : > { %s1000_s6 = sshll.u32 %s268_s7, 4  ;;  %s987_s22 = scalar_lea.sflag [#allocation5], %s1722_s12  ;;  %s1809_s6 = int_to_ptr.vmem [resolvable:$true] %s1000_s6 }
  0x70   : > { %1178 = vmatpush3.bf16.msra.mxu0 %v1330_v4  ;;  %1186 = vmatpush3.bf16.msra.mxu1 %v1331_v5  ;;  %s1441_s9 = scalar_lea.vmem %s1809_s6, 128  ;;  %p1871_p0 = scmp.ne.s32.totalorder %s1866_s23, 0 }
  0x71   : > { %1191 = vmatprep.subr.bf16.mxu0 %v1518_v0  ;;  %1199 = vmatprep.subr.bf16.mxu1 %v1518_v0  ;;  %v276_v8 = vld [vmem:[#allocation2] sm:$0x8]  ;;  %p1442_p11 = scmp.ne.s32.totalorder %s1809_s6, %s1441_s9  ;;  %s1522_s13 = smov [#allocation9]  }
  0x72   : > { %v478_v9 = vld [vmem:[#allocation2 + $0x8] sm:$0x1]  ;;  %v629_v4 = vld [vmem:[#allocation2] sm:$0x8]  ;;  %s1445_s29 = sshll.u32 %s1522_s13, 4  ;;  %s1446_s29 = int_to_ptr.vmem [resolvable:$false] %s1445_s29 }
  0x73   : > { %v830_v5 = vld [vmem:[#allocation2 + $0x8] sm:$0x1]  ;;  %p1443_p1 = pnand %p1442_p11, %p1871_p0  ;;  %s1447_s17 = scalar_lea.vmem %s1446_s29, 256 }
  0x74   : > { %p1448_p7 = scmp.lt.s32.totalorder %s1809_s6, %s1446_s29  ;;  %p1449_p9 = scmp.lt.s32.totalorder %s1447_s17, %s1441_s9 }
  0x75   : > { %v282_v10 = vld [vmem:[#allocation2 + $0x4] sm:$0xf]  ;;  %p1444_p3 = pneg %p1443_p1 }
  0x76   : > { %v277_v11 = vld [vmem:[#allocation2 + $0x4] sm:$0x7]  ;;  %v1101_v13 = vcombine.low %v276_v8, %v282_v10  ;;  %p1450_p12 = por %p1449_p9, %p1448_p7 }
  0x77   : > { %v477_v12 = vld [vmem:[#allocation2 + $0x4] sm:$0xf]  ;;  %v1105_v14 = vcombine.low %v276_v8, %v277_v11 }
  0x78   : > { %v1112_v16 = vcombine.low %v477_v12, %v478_v9  ;;  %v294_v17 = vshrl.u32 %v1101_v13, 16  ;;  %v297_v18 = vshll.u32 %v1101_v13, 16  ;;  %v552_v31 = vld [vmem:[#allocation2 + $0x4] sm:$0xe]  ;;  %v1347_v12 = vld [vmem:[#allocation8 + $0x30] sm:$0xff]   ;;  %p1451_p2 = pnand %p1450_p12, %p1444_p3 }
  0x79   : > { %v360_v19 = vrot.slane %v1105_v14, 3  ;;  %v1116_v32 = vcombine.low %v552_v31, %v478_v9 }
  0x7a   : > { %v492_v20 = vshll.u32 %v1112_v16, 16  ;;  %v296_v21 = vrot.slane %v294_v17, 3  ;;  %v299_v22 = vrot.slane %v297_v18, 4  ;;  %v490_v24 = vshrl.u32 %v1112_v16, 16 }
  0x7b   : > { %1188 = vmatmul.mubr.msk.bf16.vlgmr.msra.gmra.mrb[0].mxu1 %vm313_vm2, %v360_v19  ;;  %v561_v34 = vrot.slane %v1116_v32, 1  ;;  %v1348_v19 = vld [vmem:[#allocation8 + $0x20] sm:$0xff]  }
  0x7c   : > { %1200 = vmatpush3.bf16.msra.mxu1 %v1334_v15  ;;  %1203 = vmatprep.mubr.msk.bf16.mxu1 %vm1520_vm1, %v1518_v0  ;;  %v494_v25 = vrot.slane %v492_v20, 1  ;;  %v300_v26 = vor.u32 %v299_v22, %v296_v21  ;;  %v1349_v20 = vld [vmem:[#allocation8 + $0x38] sm:$0xff]  }
  0x7d   : > { %1201 = vmatprep.subr.bf16.mxu1 %v1518_v0 }
  0x7e   : > { %1180 = vmatmul.mubr.msk.bf16.vlgmr.msra.gmra.mrb[0].mxu0 %vm313_vm2, %v300_v26  ;;  %v495_v29 = vor.u32 %v494_v25, %v490_v24  ;;  %v1350_v24 = vld [vmem:[#allocation8 + $0x28] sm:$0xff]   ;;  %v1352_v26 = vld [vmem:[#allocation8 + $0x40] sm:$0xff]  }
  0x7f   : > { %1192 = vmatpush3.bf16.msra.mxu0 %v1333_v23  ;;  %1195 = vmatprep.mubr.msk.bf16.mxu0 %vm1520_vm1, %v1518_v0 }
  0x80   : > { %1193 = vmatprep.subr.bf16.mxu0 %v1518_v0  ;;  %1202 = vmatpush3.bf16.msra.mxu1 %v1336_v27 }
  0x81   : > { %1215 = vmatprep.subr.bf16.mxu1 %v1518_v0 }
  0x83   : > { %1194 = vmatpush3.bf16.msra.mxu0 %v1335_v28  ;;  %1204 = vmatmul.mubr.msk.bf16.vlgmr.msra.gmra.mrb[4].mxu1 %vm313_vm2, %v495_v29  ;;  %v1353_v28 = vld [vmem:[#allocation8 + $0x48] sm:$0xff]  }
  0x84   : > { %1207 = vmatprep.subr.bf16.mxu0 %v1518_v0  ;;  %1219 = vmatprep.mubr.msk.bf16.mxu1 %vm1520_vm1, %v1518_v0 }
  0x85   : > { %1216 = vmatpush3.bf16.msra.mxu1 %v1342_v36 }
  0x86   : > { %1196 = vmatmul.mubr.msk.bf16.vlgmr.msra.gmra.mrb[4].mxu0 %vm313_vm2, %v282_v10  ;;  %1217 = vmatprep.subr.bf16.mxu1 %v1518_v0 }
  0x87   : > { %1208 = vmatpush3.bf16.msra.mxu0 %v1337_v30  ;;  %1211 = vmatprep.mubr.msk.bf16.mxu0 %vm1520_vm1, %v1518_v0 }
  0x88   : > { %1209 = vmatprep.subr.bf16.mxu0 %v1518_v0 }
  0x89   : > { %1218 = vmatpush3.bf16.msra.mxu1 %v1344_v38 }
  0x8a   : > { %1231 = vmatprep.subr.bf16.mxu1 %v1518_v0 }
  0x8b   : > { %1210 = vmatpush3.bf16.msra.mxu0 %v1339_v33 }
  0x8c   : > { %1223 = vmatprep.subr.bf16.mxu0 %v1518_v0 }
  0x8e   : > { %1212 = vmatmul.mubr.msk.bf16.vlgmr.msra.gmra.mrb[8].mxu0 %vm313_vm2, %v561_v34 }
  0x8f   : > { %1227 = vmatprep.mubr.msk.bf16.mxu0 %vm1520_vm1, %v1518_v0  ;;  %1224 = vmatpush3.bf16.msra.mxu0 %v1341_v35 }
  0x90   : > { %1225 = vmatprep.subr.bf16.mxu0 %v1518_v0 }
  0x93   : > { %1226 = vmatpush3.bf16.msra.mxu0 %v1343_v37 }
  0x94   : > { %1239 = vmatprep.subr.bf16.mxu0 %v1518_v0 }
 0x14e   : > { %v410_v39 = vpop.f32.mrb[0].mxu1 }
 0x14f   : > { %v1189_v40 = vpop.f32.mrb[1].mxu1 }
 0x150   : > { %v413_v41 = vpop.f32.mrb[2].mxu1 }
 0x151   : > { %v1190_v42 = vpop.f32.mrb[3].mxu1  ;;  %v351_v43 = vpop.f32.mrb[0].mxu0 }
 0x152   : > { %v411_v44 = vadd.f32 %v410_v39, %v351_v43  ;;  %v1181_v45 = vpop.f32.mrb[1].mxu0 }
 0x153   : > { %v354_v46 = vpop.f32.mrb[2].mxu0 }
 0x154   : > { %v1182_v47 = vpop.f32.mrb[3].mxu0 }
 0x156   : > { %v545_v48 = vpop.f32.mrb[4].mxu1 }
 0x157   : > { %v1205_v49 = vpop.f32.mrb[5].mxu1 }
 0x158   : > { %v548_v50 = vpop.f32.mrb[6].mxu1 }
 0x159   : > { %v470_v51 = vpop.f32.mrb[4].mxu0  ;;  %v1206_v52 = vpop.f32.mrb[7].mxu1  ;;  %v1140_v50 = vld [vmem:[%s1856_s4] ss:$0 sm:$0xff] }
 0x15a   : > { %v476_v53 = vadd.f32 %v470_v51, %v411_v44  ;;  %v1197_v54 = vpop.f32.mrb[5].mxu0 }
 0x15b   : > { %v473_v55 = vpop.f32.mrb[6].mxu0 }
 0x15c   : > { %v551_v56 = vadd.f32 %v545_v48, %v476_v53  ;;  %v1198_v57 = vpop.f32.mrb[7].mxu0 }
 0x161   : > { %v611_v58 = vpop.f32.mrb[8].mxu0 }
 0x162   : > { %v617_v60 = vadd.f32 %v611_v58, %v551_v56  ;;  %v1213_v61 = vpop.f32.mrb[9].mxu0  ;;  %v981_v56 = vpop.permute.xlu0 %980 }
 0x163   : > { %v614_v62 = vpop.f32.mrb[10].mxu0 }
 0x164   : > { %v625_v63 = vadd.f32 %v1120_v59, %v617_v60  ;;  %v1214_v1 = vpop.f32.mrb[11].mxu0 }
 0x166   : > { %v626_v2 = vmax.f32 %v625_v63, 0.0 }
 0x168   : > { %v627_v3 = vpack.c.bf16 %v626_v2, %v626_v2 }
 0x16a   : > { %628 = vst.msk [vmem:[#allocation2 + $0x4] sm:$0xf] %vm270_vm0, %v627_v3 }
 0x171   : > { %v630_v6 = vld [vmem:[#allocation2 + $0x4] sm:$0x7] }
 0x172   : > { %v635_v7 = vld [vmem:[#allocation2 + $0x4] sm:$0xf]  ;;  %v1125_v10 = vcombine.low %v629_v4, %v630_v6 }
 0x173   : > { %v829_v8 = vld [vmem:[#allocation2 + $0x4] sm:$0xf]  ;;  %v1121_v9 = vcombine.low %v629_v4, %v635_v7 }
 0x174   : > { %v1132_v11 = vcombine.low %v829_v8, %v830_v5  ;;  %v712_v13 = vrot.slane %v1125_v10, 3  ;;  %v904_v27 = vld [vmem:[#allocation2 + $0x4] sm:$0xe] }
 0x175   : > { %v647_v14 = vshrl.u32 %v1121_v9, 16  ;;  %v650_v15 = vshll.u32 %v1121_v9, 16  ;;  %v1136_v29 = vcombine.low %v904_v27, %v830_v5 }
 0x176   : > { %v844_v16 = vshll.u32 %v1132_v11, 16  ;;  %1228 = vmatmul.mubr.msk.bf16.vlgmr.msra.gmra.mrb[12].mxu0 %vm313_vm2, %v712_v13  ;;  %v842_v23 = vshrl.u32 %v1132_v11, 16 }
 0x177   : > { %v649_v17 = vrot.slane %v647_v14, 3  ;;  %v652_v18 = vrot.slane %v650_v15, 4  ;;  %1240 = vmatpush3.bf16.msra.mxu0 %v1347_v12  ;;  %1243 = vmatprep.mubr.msk.bf16.mxu0 %vm1520_vm1, %v1518_v0  ;;  %v913_v30 = vrot.slane %v1136_v29, 1 }
 0x178   : > { %1241 = vmatprep.subr.bf16.mxu0 %v1518_v0  ;;  %v846_v22 = vrot.slane %v844_v16, 1 }
 0x179   : > { %v653_v21 = vor.u32 %v652_v18, %v649_v17 }
 0x17a   : > { %v847_v25 = vor.u32 %v846_v22, %v842_v23 }
 0x17b   : > { %1220 = vmatmul.mubr.msk.bf16.vlgmr.msra.gmra.mrb[8].mxu1 %vm313_vm2, %v653_v21  ;;  %1242 = vmatpush3.bf16.msra.mxu0 %v1349_v20 }
 0x17c   : > { %1232 = vmatpush3.bf16.msra.mxu1 %v1348_v19  ;;  %1235 = vmatprep.mubr.msk.bf16.mxu1 %vm1520_vm1, %v1518_v0 }
 0x17d   : > { %1233 = vmatprep.subr.bf16.mxu1 %v1518_v0 }
 0x17e   : > { %1244 = vmatmul.mubr.msk.bf16.vlgmr.msra.gmra.mrb[16].mxu0 %vm313_vm2, %v847_v25 }
 0x180   : > { %1234 = vmatpush3.bf16.msra.mxu1 %v1350_v24 }
 0x181   : > { %1247 = vmatprep.subr.bf16.mxu1 %v1518_v0 }
 0x183   : > { %1236 = vmatmul.mubr.msk.bf16.vlgmr.msra.gmra.mrb[12].mxu1 %vm313_vm2, %v635_v7 }
 0x184   : > { %1248 = vmatpush3.bf16.msra.mxu1 %v1352_v26  ;;  %1251 = vmatprep.mubr.msk.bf16.mxu1 %vm1520_vm1, %v1518_v0 }
 0x185   : > { %1249 = vmatprep.subr.bf16.mxu1 %v1518_v0 }
 0x188   : > { %1250 = vmatpush3.bf16.msra.mxu1 %v1353_v28 }
 0x18b   : > { %1252 = vmatmul.mubr.msk.bf16.vlgmr.msra.gmra.mrb[16].mxu1 %vm313_vm2, %v913_v30 }
 0x249   : > { %v762_v31 = vpop.f32.mrb[12].mxu0 }
 0x24a   : > { %v1229_v32 = vpop.f32.mrb[13].mxu0 }
 0x24b   : > { %v765_v33 = vpop.f32.mrb[14].mxu0 }
 0x24c   : > { %v1230_v34 = vpop.f32.mrb[15].mxu0 }
 0x24e   : > { %v703_v35 = vpop.f32.mrb[8].mxu1 }
 0x24f   : > { %v763_v36 = vadd.f32 %v762_v31, %v703_v35  ;;  %v1221_v37 = vpop.f32.mrb[9].mxu1 }
 0x250   : > { %v706_v38 = vpop.f32.mrb[10].mxu1 }
 0x251   : > { %v1222_v39 = vpop.f32.mrb[11].mxu1  ;;  %v897_v40 = vpop.f32.mrb[16].mxu0 }
 0x252   : > { %v1245_v41 = vpop.f32.mrb[17].mxu0 }
 0x253   : > { %v900_v42 = vpop.f32.mrb[18].mxu0 }
 0x254   : > { %v1246_v0 = vpop.f32.mrb[19].mxu0 }
 0x256   : > { %v822_v43 = vpop.f32.mrb[12].mxu1 }
 0x257   : > { %v828_v44 = vadd.f32 %v822_v43, %v763_v36  ;;  %v1237_v45 = vpop.f32.mrb[13].mxu1 }
 0x258   : > { %v825_v46 = vpop.f32.mrb[14].mxu1 }
 0x259   : > { %v1238_v47 = vpop.f32.mrb[15].mxu1  ;;  %v903_v48 = vadd.f32 %v897_v40, %v828_v44 }
 0x25e   : > { %v963_v49 = vpop.f32.mrb[16].mxu1 }
 0x25f   : > { %v969_v51 = vadd.f32 %v963_v49, %v903_v48  ;;  %v1253_v52 = vpop.f32.mrb[17].mxu1 }
 0x260   : > { %v966_v53 = vpop.f32.mrb[18].mxu1 }
 0x261   : > { %v977_v54 = vadd.f32 %v1140_v50, %v969_v51  ;;  %v1254_v55 = vpop.f32.mrb[19].mxu1 }
 0x263   : > { %v978_v57 = vmax.f32 %v977_v54, 0.0 }
 0x265   : > { %v983_v58 = vsel %vm313_vm2, %v978_v57, %v981_v56 }
 0x266   : > { %985 = vst.msk [vmem:[%s268_s7] sm:$0xff] %vm984_vm3, %v983_v58 }
 0x267   : > { %1454 = shalt.err (!%p1451_p2)
}
 0x268   : > { %s1455_s12 = scalar_lea.hbm %s1807_s16, 128  ;;  %s1459_s8 = scalar_lea.hbm %s1857_s5, 256 }
 0x269   : > { %p1456_p13 = scmp.ne.s32.totalorder %s1807_s16, %s1455_s12  ;;  %p1460_p4 = scmp.lt.u32.totalorder %s1807_s16, %s1857_s5 }
 0x26a   : > { %p1461_p5 = scmp.lt.u32.totalorder %s1459_s8, %s1455_s12  ;;  %p1463_p11 = scmp.lt.u32.totalorder %s1455_s12, %s1807_s16 }
 0x26b   : > { %p1457_p6 = pnand %p1456_p13, %p1871_p0 }
 0x26c   : > { %p1462_p8 = por %p1461_p5, %p1460_p4 }
 0x26d   : > { %p1458_p10 = pneg %p1457_p6 }
 0x26e   : > { %p1464_p1 = por %p1463_p11, %p1462_p8 }
 0x270   : > { %p1465_p3 = pnand %p1464_p1, %p1458_p10 }
 0x272   : > { %1468 = shalt.err (!%p1465_p3)
}
 0x273   : > { %1265 = dma.vmem_to_hbm [thread:$0]  (%p1871_p0), %s1809_s6, 128, %s1807_s16, %s987_s22  }
 0x274 PF: > { %s1012_s28 = sand.u32 1, %s1499_s18   ;;  %p1872_p7 = scmp.ne.s32.totalorder %s1862_s25, 0 }
 0x275   : > { %p1873_p9 = scmp.ge.s32.totalorder %s1511_s21, 2  ;;  %s1013_s7 = scalar_lea.sflag [#allocation5], %s1012_s28 }
 0x277   : > { %p1279_p12 = pnand %p1873_p9, %p1872_p7 }
 0x279   : > { %1494 = dma.done.wait (!%p1279_p12), %s1013_s7, 128  }
 0x27a   : > { %1496 = vsyncadd (!%p1279_p12), %s1013_s7, 4294967168  ;;  %p19_p2 = scmp.ge.s32.totalorder %s1663_s14, 4   ;;  %s1874_s18 = smov %s1503_s19 }
 0x27b   : > { %s1875_s19 = smov %s1507_s20  ;;  %s1876_s20 = smov %s1679_s27 }
 0x27c   : > { %s1877_s21 = smov %s1663_s14  ;;  %21 = sbr.rel (!%p19_p2) target bundleno = 6 (0x6), region = 101 }
 0x283   :  { %1018 = vsyncpa [#allocation4], 1 }
 0x284   :  { %1020 = vsyncpa [#allocation4 + $0x1], 1 }
 0x285   :  { %1021 = vsyncpa [#allocation7], 1 }
 0x286   :  { %1022 = vsyncpa [#allocation5], 1 }
 0x287   :  { %1024 = vsyncpa [#allocation5 + $0x1], 1 }

</bundles_post_ra>
